<compile_context>
chip_gen: v7x
topology: tpu7x:2x2x1
jax: 0.10.0
libtpu: 0.0.40
codegen_flags: <defaults>
</compile_context>

<pallas_src>
import math

import jax
import jax.numpy as jnp
from jax.experimental import pallas as pl
from jax.experimental.pallas import tpu as pltpu


def _round_up(v, m):
    return ((v + m - 1) // m) * m


def net_kernel(x_ref, w1_ref, b1_ref, w2_ref, b2_ref, w3_ref, b3_ref, o_ref):
    # x may be f32 or bf16 in HBM/VMEM; all compute is done in f32.
    x = x_ref[...].astype(jnp.float32)                                  # (TB, 16)

    # fc1 (+ folded bn1) + relu    (dropout = identity in eval mode)
    h = jnp.dot(x, w1_ref[...], preferred_element_type=jnp.float32)    # (TB, 32)
    h = jnp.maximum(h + b1_ref[...], 0.0)

    # fc2 (+ folded bn2) + relu
    h = jnp.dot(h, w2_ref[...], preferred_element_type=jnp.float32)    # (TB, 12)
    h = jnp.maximum(h + b2_ref[...], 0.0)

    # fc3 — true 10-wide output block (no lane padding of the result in HBM)
    o = jnp.dot(h, w3_ref[...], preferred_element_type=jnp.float32)    # (TB, 10)
    o_ref[...] = (o + b3_ref[...]).astype(o_ref.dtype)


def fold_params(params, eps=1e-5):
    """Fold eval-mode BatchNorm1d (running stats) into the preceding Linear.
    Call once at load time; the result is what net_forward consumes."""
    def fold(w, b, gamma, beta, rmean, rvar):
        scale = gamma / jnp.sqrt(rvar + eps)           # (out,)
        shift = beta - rmean * scale                   # (out,)
        return w * scale[None, :], b * scale + shift   # (in,out), (out,)

    w1f, b1f = fold(params["w1"], params["b1"],
                    params["bn1_gamma"], params["bn1_beta"],
                    params["bn1_mean"], params["bn1_var"])
    w2f, b2f = fold(params["w2"], params["b2"],
                    params["bn2_gamma"], params["bn2_beta"],
                    params["bn2_mean"], params["bn2_var"])
    return {
        "w1": w1f, "b1": b1f.reshape(1, -1),
        "w2": w2f, "b2": b2f.reshape(1, -1),
        "w3": params["w3"], "b3": params["b3"].reshape(1, -1),
    }


def net_forward(x, folded, tile_b=4096, input_dtype=None):
    """x: (B, 16) float32.  folded: output of fold_params(params).
    Returns (B, 10) float32 logits (eval-mode forward).

    input_dtype: optionally jnp.bfloat16 to halve HBM read traffic
    (compute stays in f32; numerics change slightly)."""
    B, F = x.shape
    assert F == 16

    if input_dtype is not None and x.dtype != input_dtype:
        x = x.astype(input_dtype)

    # ---- Batch tile: multiple of 8 (f32 sublanes), large to amortize per-step
    # pipeline overhead, but split so grid >= 2 when the batch is big enough
    # (v7x megacore sharding of the "parallel" batch axis).
    Bp8 = _round_up(B, 8)
    tb = max(8, min(_round_up(int(tile_b), 8), Bp8))
    if tb >= Bp8 and Bp8 >= 2 * 1024:
        tb = _round_up(-(-Bp8 // 2), 8)          # halve -> 2 grid steps
    Bp = _round_up(B, tb)
    if Bp != B:
        x = jnp.pad(x, ((0, Bp - B), (0, 0)))
    grid = (Bp // tb,)

    args = (x, folded["w1"], folded["b1"], folded["w2"], folded["b2"],
            folded["w3"], folded["b3"])

    # Weight/bias blocks cover the full (tiny) arrays and stay VMEM-resident
    # (index_map is grid-invariant); only batch-tiled x/out blocks stream.
    in_specs = [
        pl.BlockSpec((tb, 16), lambda i: (i, 0)),     # x
        pl.BlockSpec((16, 32), lambda i: (0, 0)),     # w1 (bn-folded)
        pl.BlockSpec((1, 32), lambda i: (0, 0)),      # b1 (bn-folded)
        pl.BlockSpec((32, 12), lambda i: (0, 0)),     # w2 (bn-folded)
        pl.BlockSpec((1, 12), lambda i: (0, 0)),      # b2 (bn-folded)
        pl.BlockSpec((12, 10), lambda i: (0, 0)),     # w3
        pl.BlockSpec((1, 10), lambda i: (0, 0)),      # b3
    ]
    out_spec = pl.BlockSpec((tb, 10), lambda i: (i, 0))

    # Bandwidth-bound custom call: tell XLA roughly what it costs.
    in_bytes = Bp * 16 * x.dtype.itemsize
    w_bytes = sum(int(a.size) * a.dtype.itemsize for a in args[1:])
    out_bytes = Bp * 10 * 4
    cost = pl.CostEstimate(
        flops=2 * Bp * (16 * 32 + 32 * 12 + 12 * 10),
        transcendentals=0,
        bytes_accessed=in_bytes + w_bytes + out_bytes,
    )

    out_padded = pl.pallas_call(
        net_kernel,
        out_shape=jax.ShapeDtypeStruct((Bp, 10), jnp.float32),
        grid=grid,
        in_specs=in_specs,
        out_specs=out_spec,
        compiler_params=pltpu.CompilerParams(
            dimension_semantics=("parallel",),   # shard batch tiles across TCs
        ),
        cost_estimate=cost,
    )(*args)

    return out_padded[:B, :]


def init_params(key):
    """Deterministic init matching Net.weight_init():
       kaiming_uniform_ on Linear weights, zeros for biases,
       gamma=1 / beta=0 and fresh running stats for BatchNorm1d."""
    def kaiming_uniform(key, fan_in, fan_out):
        # nn.init.kaiming_uniform_ default: gain = sqrt(2), bound = gain*sqrt(3/fan_in)
        bound = math.sqrt(6.0 / fan_in)
        # PyTorch weight is (out, in); we store transposed (in, out) for x @ W.
        return jax.random.uniform(key, (fan_in, fan_out), jnp.float32,
                                  minval=-bound, maxval=bound)

    k1, k2, k3 = jax.random.split(key, 3)
    return {
        "w1": kaiming_uniform(k1, 16, 32), "b1": jnp.zeros((32,), jnp.float32),
        "w2": kaiming_uniform(k2, 32, 12), "b2": jnp.zeros((12,), jnp.float32),
        "w3": kaiming_uniform(k3, 12, 10), "b3": jnp.zeros((10,), jnp.float32),
        "bn1_gamma": jnp.ones((32,), jnp.float32),
        "bn1_beta": jnp.zeros((32,), jnp.float32),
        "bn1_mean": jnp.zeros((32,), jnp.float32),
        "bn1_var": jnp.ones((32,), jnp.float32),
        "bn2_gamma": jnp.ones((12,), jnp.float32),
        "bn2_beta": jnp.zeros((12,), jnp.float32),
        "bn2_mean": jnp.zeros((12,), jnp.float32),
        "bn2_var": jnp.ones((12,), jnp.float32),
    }


def reference_forward(x, params):
    """Pure-JAX reference of the eval-mode forward pass."""
    eps = 1e-5
    h = x @ params["w1"] + params["b1"]
    h = (h - params["bn1_mean"]) / jnp.sqrt(params["bn1_var"] + eps) \
        * params["bn1_gamma"] + params["bn1_beta"]
    h = jnp.maximum(h, 0.0)
    h = h @ params["w2"] + params["b2"]
    h = (h - params["bn2_mean"]) / jnp.sqrt(params["bn2_var"] + eps) \
        * params["bn2_gamma"] + params["bn2_beta"]
    h = jnp.maximum(h, 0.0)
    return h @ params["w3"] + params["b3"]


if __name__ == "__main__":
    key = jax.random.PRNGKey(0)
    kx, kx2, kp = jax.random.split(key, 3)

    params = init_params(kp)
    folded = fold_params(params)   # BN fold done once, outside the hot path

    # Small batch (single tile), exact f32 path.
    B = 8
    x = jax.random.normal(kx, (B, 16), jnp.float32)
    out = jax.block_until_ready(net_forward(x, folded))
    ref = reference_forward(x, params)
    assert out.shape == (B, 10)
    assert jnp.allclose(out, ref, atol=1e-4, rtol=1e-4)

    # Non-multiple batch with a small explicit tile: exercises grid > 1 + padding.
    B2 = 136
    x2 = jax.random.normal(kx2, (B2, 16), jnp.float32)
    out2 = jax.block_until_ready(net_forward(x2, folded, tile_b=64))
    ref2 = reference_forward(x2, params)
    assert out2.shape == (B2, 10)
    assert jnp.allclose(out2, ref2, atol=1e-4, rtol=1e-4)

    # Optional bf16-input path (halved HBM read traffic); looser tolerance.
    out3 = jax.block_until_ready(
        net_forward(x2, folded, tile_b=64, input_dtype=jnp.bfloat16))
    assert out3.shape == (B2, 10)
    assert jnp.allclose(out3, ref2, atol=5e-2, rtol=5e-2)

    # TODO(synk): train-mode BatchNorm (batch stats) and Dropout RNG masks are
    # intentionally not implemented; this kernel covers eval/inference only.

    print("KERNEL_OK")
</pallas_src>

<mosaic_0001>
module attributes {stable_mosaic.version = 11 : i64} {
  func.func @net_kernel(%arg0: i32, %arg1: memref<8x16xf32, #tpu.memory_space<vmem>>, %arg2: memref<16x32xf32, #tpu.memory_space<vmem>>, %arg3: memref<1x32xf32, #tpu.memory_space<vmem>>, %arg4: memref<32x12xf32, #tpu.memory_space<vmem>>, %arg5: memref<1x12xf32, #tpu.memory_space<vmem>>, %arg6: memref<12x10xf32, #tpu.memory_space<vmem>>, %arg7: memref<1x10xf32, #tpu.memory_space<vmem>>, %arg8: memref<8x10xf32, #tpu.memory_space<vmem>>) attributes {dimension_semantics = [#tpu.dimension_semantics<parallel>], iteration_bounds = array<i64: 1>, scalar_prefetch = 0 : i64, scratch_operands = 0 : i64, tpu.core_type = #tpu.core_type<tc>, window_params = [{transform_indices = @transform_0, window_bounds = array<i64: 8, 16>}, {pipeline_mode = #tpu.pipeline_mode<synchronous>, transform_indices = @transform_1, window_bounds = array<i64: 16, 32>}, {pipeline_mode = #tpu.pipeline_mode<synchronous>, transform_indices = @transform_2, window_bounds = array<i64: 1, 32>}, {pipeline_mode = #tpu.pipeline_mode<synchronous>, transform_indices = @transform_3, window_bounds = array<i64: 32, 12>}, {pipeline_mode = #tpu.pipeline_mode<synchronous>, transform_indices = @transform_4, window_bounds = array<i64: 1, 12>}, {pipeline_mode = #tpu.pipeline_mode<synchronous>, transform_indices = @transform_5, window_bounds = array<i64: 12, 10>}, {pipeline_mode = #tpu.pipeline_mode<synchronous>, transform_indices = @transform_6, window_bounds = array<i64: 1, 10>}, {transform_indices = @transform_7, window_bounds = array<i64: 8, 10>}]} {
    %c0 = arith.constant 0 : index
    %c0_0 = arith.constant 0 : index
    %0 = vector.load %arg1[%c0, %c0_0] : memref<8x16xf32, #tpu.memory_space<vmem>>, vector<8x16xf32>
    %c0_1 = arith.constant 0 : index
    %c0_2 = arith.constant 0 : index
    %1 = vector.load %arg2[%c0_1, %c0_2] : memref<16x32xf32, #tpu.memory_space<vmem>>, vector<16x32xf32>
    %cst = arith.constant dense<0.000000e+00> : vector<8x32xf32>
    %2 = tpu.matmul %0, %1, %cst {dimension_numbers = #tpu.dot_dimension_numbers<[1], [0], [0], [1], [0, 0, 1, 1], [], []>} : vector<8x16xf32>, vector<16x32xf32>, vector<8x32xf32> -> vector<8x32xf32>
    %c0_3 = arith.constant 0 : index
    %c0_4 = arith.constant 0 : index
    %3 = vector.load %arg3[%c0_3, %c0_4] : memref<1x32xf32, #tpu.memory_space<vmem>>, vector<1x32xf32>
    %4 = vector.broadcast %3 : vector<1x32xf32> to vector<8x32xf32>
    %5 = arith.addf %2, %4 : vector<8x32xf32>
    %cst_5 = arith.constant 0.000000e+00 : f32
    %6 = vector.broadcast %cst_5 : f32 to vector<8x32xf32>
    %7 = arith.maximumf %5, %6 : vector<8x32xf32>
    %c0_6 = arith.constant 0 : index
    %c0_7 = arith.constant 0 : index
    %8 = vector.load %arg4[%c0_6, %c0_7] : memref<32x12xf32, #tpu.memory_space<vmem>>, vector<32x12xf32>
    %cst_8 = arith.constant dense<0.000000e+00> : vector<8x12xf32>
    %9 = tpu.matmul %7, %8, %cst_8 {dimension_numbers = #tpu.dot_dimension_numbers<[1], [0], [0], [1], [0, 0, 1, 1], [], []>} : vector<8x32xf32>, vector<32x12xf32>, vector<8x12xf32> -> vector<8x12xf32>
    %c0_9 = arith.constant 0 : index
    %c0_10 = arith.constant 0 : index
    %10 = vector.load %arg5[%c0_9, %c0_10] : memref<1x12xf32, #tpu.memory_space<vmem>>, vector<1x12xf32>
    %11 = vector.broadcast %10 : vector<1x12xf32> to vector<8x12xf32>
    %12 = arith.addf %9, %11 : vector<8x12xf32>
    %cst_11 = arith.constant 0.000000e+00 : f32
    %13 = vector.broadcast %cst_11 : f32 to vector<8x12xf32>
    %14 = arith.maximumf %12, %13 : vector<8x12xf32>
    %c0_12 = arith.constant 0 : index
    %c0_13 = arith.constant 0 : index
    %15 = vector.load %arg6[%c0_12, %c0_13] : memref<12x10xf32, #tpu.memory_space<vmem>>, vector<12x10xf32>
    %cst_14 = arith.constant dense<0.000000e+00> : vector<8x10xf32>
    %16 = tpu.matmul %14, %15, %cst_14 {dimension_numbers = #tpu.dot_dimension_numbers<[1], [0], [0], [1], [0, 0, 1, 1], [], []>} : vector<8x12xf32>, vector<12x10xf32>, vector<8x10xf32> -> vector<8x10xf32>
    %c0_15 = arith.constant 0 : index
    %c0_16 = arith.constant 0 : index
    %17 = vector.load %arg7[%c0_15, %c0_16] : memref<1x10xf32, #tpu.memory_space<vmem>>, vector<1x10xf32>
    %18 = vector.broadcast %17 : vector<1x10xf32> to vector<8x10xf32>
    %19 = arith.addf %16, %18 : vector<8x10xf32>
    %c0_17 = arith.constant 0 : index
    %c0_18 = arith.constant 0 : index
    %20 = vector.load %arg8[%c0_17, %c0_18] : memref<8x10xf32, #tpu.memory_space<vmem>>, vector<8x10xf32>
    tpu.vector_store %arg8[%c0_17, %c0_18], %19 {strides = array<i32>} : memref<8x10xf32, #tpu.memory_space<vmem>>, vector<8x10xf32>,
    return
  }
  func.func @transform_0(%arg0: i32) -> (i32, i32) {
    %c0_i32 = arith.constant 0 : i32
    %c0_i32_0 = arith.constant 0 : i32
    return %arg0, %c0_i32 : i32, i32
  }
  func.func @transform_1(%arg0: i32) -> (i32, i32) {
    %c0_i32 = arith.constant 0 : i32
    %c0_i32_0 = arith.constant 0 : i32
    %c0_i32_1 = arith.constant 0 : i32
    return %c0_i32, %c0_i32_0 : i32, i32
  }
  func.func @transform_2(%arg0: i32) -> (i32, i32) {
    %c0_i32 = arith.constant 0 : i32
    %c0_i32_0 = arith.constant 0 : i32
    %c0_i32_1 = arith.constant 0 : i32
    return %c0_i32, %c0_i32_0 : i32, i32
  }
  func.func @transform_3(%arg0: i32) -> (i32, i32) {
    %c0_i32 = arith.constant 0 : i32
    %c0_i32_0 = arith.constant 0 : i32
    %c0_i32_1 = arith.constant 0 : i32
    return %c0_i32, %c0_i32_0 : i32, i32
  }
  func.func @transform_4(%arg0: i32) -> (i32, i32) {
    %c0_i32 = arith.constant 0 : i32
    %c0_i32_0 = arith.constant 0 : i32
    %c0_i32_1 = arith.constant 0 : i32
    return %c0_i32, %c0_i32_0 : i32, i32
  }
  func.func @transform_5(%arg0: i32) -> (i32, i32) {
    %c0_i32 = arith.constant 0 : i32
    %c0_i32_0 = arith.constant 0 : i32
    %c0_i32_1 = arith.constant 0 : i32
    return %c0_i32, %c0_i32_0 : i32, i32
  }
  func.func @transform_6(%arg0: i32) -> (i32, i32) {
    %c0_i32 = arith.constant 0 : i32
    %c0_i32_0 = arith.constant 0 : i32
    %c0_i32_1 = arith.constant 0 : i32
    return %c0_i32, %c0_i32_0 : i32, i32
  }
  func.func @transform_7(%arg0: i32) -> (i32, i32) {
    %c0_i32 = arith.constant 0 : i32
    %c0_i32_0 = arith.constant 0 : i32
    return %arg0, %c0_i32 : i32, i32
  }
}

</mosaic_0001>

<bundles_post_ra>
// kernel: tpu_custom_call.1
= control target key start
LH: loop header
LB: loop body
LE: loop exit
PB: predicated region body
PF: predicated region fallthrough
CT: control target
= control target key end

     0   :  { %v386_v2 = vmov 0.0|0.0   ;;  %vm387_vm0 = vmmov 0   ;;  %v388_v4 = vmov 0.0   ;;  %s482_s0 = inlined_call_operand.vmem [shape: f32[8,16], index: 0, kind: input, shape index: {}]   ;;  %s483_s1 = inlined_call_operand.vmem [shape: f32[16,32], index: 1, kind: input, shape index: {}]   ;;  %s484_s2 = inlined_call_operand.vmem [shape: f32[1,32], index: 2, kind: input, shape index: {}]   ;;  %s485_s3 = inlined_call_operand.vmem [shape: f32[32,12], index: 3, kind: input, shape index: {}]   ;;  %s486_s4 = inlined_call_operand.vmem [shape: f32[1,12], index: 4, kind: input, shape index: {}]   ;;  %s487_s5 = inlined_call_operand.vmem [shape: f32[12,10], index: 5, kind: input, shape index: {}]   ;;  %s488_s6 = inlined_call_operand.vmem [shape: f32[1,10], index: 6, kind: input, shape index: {}]   ;;  %s489_s7 = inlined_call_operand.hbm [shape: f32[8,10], index: 7, kind: output, shape index: {}]  }
   0x1   :  { %v28_v0 = vld [vmem:[%s483_s1] sm:$0xff]  ;;  %v29_v1 = vld [vmem:[%s483_s1 + $0x8] sm:$0xff]  ;;  %344 = vmatprep.subr.bf16.mxu0 %v386_v2  ;;  %323 = vmatprep.mubr.msk.f32.mxu0 %vm387_vm0, %v388_v4 }
   0x2   :  { %v345_v3 = vpack.c.bf16 %v29_v1, %v28_v0  ;;  %v112_v5 = vld [vmem:[%s485_s3] sm:$0xff]  ;;  %v113_v6 = vld [vmem:[%s485_s3 + $0x8] sm:$0xff]  ;;  %347 = vmatprep.subr.bf16.mxu1 %v386_v2  ;;  %334 = vmatprep.mubr.msk.f32.mxu1 %vm387_vm0, %v388_v4 }
   0x3   :  { %v348_v7 = vpack.c.bf16 %v113_v6, %v112_v5 }
   0x4   :  { %12 = vsyncpa [#allocation3], 0  ;;  %346 = vmatpush3.bf16.msra.mxu0 %v345_v3  ;;  %v27_v8 = vld [vmem:[%s482_s0] sm:$0xff]  ;;  %vm37_vm1 = vcmask 130048   ;;  %v114_v9 = vld [vmem:[%s485_s3 + $0x10] sm:$0xff]  ;;  %vm123_vm2 = vcmask 261120  }
   0x5   :  { %349 = vmatpush3.bf16.msra.mxu1 %v348_v7  ;;  %353 = vmatprep.subr.bf16.mxu0 %v386_v2  ;;  %v115_v10 = vld [vmem:[%s485_s3 + $0x18] sm:$0xff]  ;;  %v301_v12 = vld [vmem:[%s484_s2] ss:$0 sm:$0xff]  ;;  %v199_v18 = vld [vmem:[%s487_s5 + $0x8] sm:$0xf]  ;;  %vm211_vm3 = vcmask 1043456  }
   0x6   :  { %350 = vmatprep.subr.bf16.mxu1 %v386_v2  ;;  %v351_v11 = vpack.c.bf16 %v115_v10, %v114_v9  ;;  %v198_v17 = vld [vmem:[%s487_s5] sm:$0xff]  ;;  %vm389_vm4 = vmmov 1   ;;  %vm207_vm6 = vcmask 97280   ;;  %s390_s5 = smov [#allocation2]   ;;  %vm285_vm7 = vcmask 80896  }
   0x7   :  { %324 = vmatmul.mubr.msk.f32.vlgmr.msra.gmra.mrb[0].mxu0 %vm37_vm1, %v27_v8  ;;  %v354_v19 = vpack.c.bf16 %v199_v18, %v198_v17  ;;  %vm355_vm5 = vmpackc.low %vm211_vm3, %vm389_vm4  ;;  %v303_v20 = vld [vmem:[%s486_s4] ss:$0 sm:$0xff]  ;;  %s293_s21 = sshll.u32 %s390_s5, 4  ;;  %s294_s21 = int_to_ptr.vmem [resolvable:$true] %s293_s21 }
   0x8   :  { %341 = vmatprep.mubr.msk.f32.mxu0 %vm387_vm0, %v388_v4  ;;  %v305_v25 = vld [vmem:[%s488_s6] ss:$0 sm:$0xff]  ;;  %s362_s22 = scalar_lea.vmem %s294_s21, 128  ;;  %p367_p1 = scmp.lt.s32.totalorder %s294_s21, %s294_s21 }
   0x9   :  { %352 = vmatpush3.bf16.msra.mxu1 %v351_v11  ;;  %356 = vmatpush3.bf16.msk.msra.mxu0 %vm355_vm5, %v354_v19  ;;  %p363_p0 = scmp.ne.s32.totalorder %s294_s21, %s362_s22  ;;  %p368_p2 = scmp.lt.s32.totalorder %s362_s22, %s362_s22 }
   0xb   :  { %p369_p3 = por %p368_p2, %p367_p1 }
   0xd   :  { %p370_p4 = pnand %p369_p3, %p363_p0 }
  0xda   :  { %v107_v13 = vpop.f32.mrb[0].mxu0 }
  0xdb   :  { %v108_v14 = vadd.f32 %v301_v12, %v107_v13  ;;  %v325_v15 = vpop.f32.mrb[1].mxu0 }
  0xdd   :  { %v111_v16 = vmax.f32 %v108_v14, 0.0 }
  0xdf   :  { %335 = vmatmul.mubr.msk.f32.vlgmr.msra.gmra.mrb[0].mxu1 %vm123_vm2, %v111_v16 }
 0x1b2   :  { %v193_v21 = vpop.f32.mrb[0].mxu1 }
 0x1b3   :  { %v194_v22 = vadd.f32 %v303_v20, %v193_v21  ;;  %v336_v23 = vpop.f32.mrb[1].mxu1 }
 0x1b5   :  { %v197_v24 = vmax.f32 %v194_v22, 0.0 }
 0x1b7   :  { %342 = vmatmul.mubr.msk.f32.vlgmr.msra.gmra.mrb[2].mxu0 %vm207_vm6, %v197_v24 }
 0x28a   :  { %v281_v26 = vpop.f32.mrb[2].mxu0 }
 0x28b   :  { %v282_v27 = vadd.f32 %v305_v25, %v281_v26  ;;  %v343_v28 = vpop.f32.mrb[3].mxu0 }
 0x28d   :  { %286 = vst.msk [vmem:[#allocation2] sm:$0xff] %vm285_vm7, %v282_v27 }
 0x28e   :  { %373 = shalt.err (!%p370_p4)
}
 0x28f   :  { %s374_s24 = scalar_lea.hbm %s489_s7, 128 }
 0x290   :  { %p375_p5 = scmp.ne.s32.totalorder %s489_s7, %s374_s24  ;;  %p378_p6 = scmp.lt.u32.totalorder %s374_s24, %s489_s7 }
 0x292   :  { %p380_p7 = pnand %p378_p6, %p375_p5 }
 0x294   :  { %383 = shalt.err (!%p380_p7)
}
 0x295   :  { %296 = dma.vmem_to_hbm [thread:$0]  %s294_s21, 128, %s489_s7, [#allocation3]  }
 0x296   :  { %384 = dma.done.wait [#allocation3], 128  }
 0x297   :  { %385 = vsyncadd [#allocation3], 4294967168 }
 0x298   :  { %300 = vsyncpa [#allocation3], 1 }

</bundles_post_ra>
